<compile_context>
chip_gen: v5e
topology: v5e:2x2
jax: 0.10.0
libtpu: 0.0.40
codegen_flags: <defaults>
</compile_context>

<pallas_src>
import functools

import jax
import jax.numpy as jnp
from jax.experimental import pallas as pl
from jax.experimental.pallas import tpu as pltpu


def _round_up(x, m):
    return ((x + m - 1) // m) * m


def _actor_critic_kernel(state_ref, w1_ref, w2_ref, w3_ref, b_ref, out_ref, *, H, A):
    """Fused actor + value heads for one batch tile.

    state_ref : [TB, S]       bf16
    w1_ref    : [S, 2H]       bf16   ([wa1 | wv1])
    w2_ref    : [2, H, H]     bf16   (stack: wa2, wv2)
    w3_ref    : [2, H, NW]    bf16   (W3[0,:,:A]=wa3, W3[1,:,A]=wv3)
    b_ref     : [4, BW]       f32    (rows: b1(2H), b2a(H), b2b(H), b3(NW))
    out_ref   : [TB, NW]      f32    (cols 0:A logp, col A entropy, col A+1 value)
    """
    f32 = jnp.float32
    bf16 = jnp.bfloat16
    NW = out_ref.shape[-1]

    x = state_ref[...]                                                    # [TB, S] bf16

    # ---- layer 1: single fused [S, 2H] matmul (both heads) -------------------
    h1 = jnp.tanh(jnp.dot(x, w1_ref[...], preferred_element_type=f32)
                  + b_ref[0:1, 0:2 * H])                                  # [TB, 2H] f32
    h1 = h1.astype(bf16)

    # ---- layer 2: two per-head [H,H] matmuls (no zero cross-blocks) -----------
    h2a = jnp.tanh(jnp.dot(h1[:, 0:H], w2_ref[0], preferred_element_type=f32)
                   + b_ref[1:2, 0:H]).astype(bf16)                        # actor hidden
    h2b = jnp.tanh(jnp.dot(h1[:, H:2 * H], w2_ref[1], preferred_element_type=f32)
                   + b_ref[2:3, 0:H]).astype(bf16)                        # value hidden

    # ---- layer 3: two [H, NW] matmuls summed (logits in 0:A, value in col A) --
    y = (jnp.dot(h2a, w3_ref[0], preferred_element_type=f32)
         + jnp.dot(h2b, w3_ref[1], preferred_element_type=f32)
         + b_ref[3:4, 0:NW])                                              # [TB, NW] f32

    # ---- numerically-stable log-softmax over the A logit columns --------------
    col = jax.lax.broadcasted_iota(jnp.int32, y.shape, 1)
    act = col < A
    m = jnp.max(jnp.where(act, y, jnp.float32(-1e30)), axis=-1, keepdims=True)
    e = jnp.where(act, jnp.exp(y - m), 0.0)
    s = jnp.sum(e, axis=-1, keepdims=True)
    logp = y - m - jnp.log(s)                        # valid for cols < A
    probs = e / s                                    # exact; zero on masked lanes
    ent = -jnp.sum(probs * logp, axis=-1, keepdims=True)                  # [TB, 1]
    value = jnp.sum(jnp.where(col == A, y, 0.0), axis=-1, keepdims=True)  # [TB, 1]

    # ---- assemble slab in registers, ONE dense lane-wide store ----------------
    out = jnp.where(act, logp,
          jnp.where(col == A, ent,
          jnp.where(col == A + 1, value, 0.0)))
    out_ref[...] = out


def actor_critic_forward(state, packed_params, *, action_dim, block_b=2048):
    """Runs both heads in one fused, batch-gridded Pallas kernel.

    Returns (action_probs [B,A], log_probs [B,A], entropy [B], value [B]).
    """
    W1, W2, W3, Bslab = packed_params
    B, S = state.shape
    A = action_dim
    H = W2.shape[1]
    NW = W3.shape[-1]

    x = state.astype(jnp.bfloat16)

    # batch tiling: >= 2 grid steps whenever possible (v7x 2-TC split), no padding
    if B <= 8:
        tb = B
    else:
        tb = min(block_b, _round_up(pl.cdiv(B, 2), 8))
    grid = (pl.cdiv(B, tb),)

    kernel = functools.partial(_actor_critic_kernel, H=H, A=A)

    flops = 2 * B * (S * 2 * H + 2 * H * H + 2 * H * NW)
    transcendentals = B * (2 * 2 * H + 2 * A + 1)          # tanh x2 layers, exp, log
    bytes_accessed = (B * S * 2 + W1.size * 2 + W2.size * 2 + W3.size * 2
                      + Bslab.size * 4 + B * NW * 4)

    out = pl.pallas_call(
        kernel,
        out_shape=jax.ShapeDtypeStruct((B, NW), jnp.float32),
        grid_spec=pltpu.PrefetchScalarGridSpec(
            num_scalar_prefetch=0,
            grid=grid,
            in_specs=[
                pl.BlockSpec((tb, S), lambda i: (i, 0)),       # state: tiled on batch
                pl.BlockSpec(W1.shape, lambda i: (0, 0)),      # weights: resident
                pl.BlockSpec(W2.shape, lambda i: (0, 0, 0)),
                pl.BlockSpec(W3.shape, lambda i: (0, 0, 0)),
                pl.BlockSpec(Bslab.shape, lambda i: (0, 0)),
            ],
            out_specs=pl.BlockSpec((tb, NW), lambda i: (i, 0)),
        ),
        compiler_params=pltpu.CompilerParams(
            dimension_semantics=("parallel",),                 # megacore / v7x split
        ),
        cost_estimate=pl.CostEstimate(flops=flops,
                                      transcendentals=transcendentals,
                                      bytes_accessed=bytes_accessed),
    )(x, W1, W2, W3, Bslab)

    logp = out[:, 0:A]
    entropy = out[:, A]
    value = out[:, A + 1]
    probs = jnp.exp(logp)          # exact softmax recovered from exact log-softmax
    return probs, logp, entropy, value


def evaluate(state, action, packed_params, *, action_dim):
    """Mirrors ActorCritic.evaluate(state, action)."""
    probs, logp, entropy, value = actor_critic_forward(
        state, packed_params, action_dim=action_dim)
    action_logprobs = jnp.take_along_axis(logp, action[:, None], axis=-1)[:, 0]
    # TODO(synk): PyTorch casts state_value to float64 (.double()); JAX x64 is
    # disabled by default so we keep float32.
    return action_logprobs, value, entropy, probs


# ----------------------------- parameter helpers ------------------------------

def _linear_init(key, fan_in, fan_out):
    """PyTorch nn.Linear default init: U(-1/sqrt(fan_in), 1/sqrt(fan_in))."""
    kw, kb = jax.random.split(key)
    bound = 1.0 / jnp.sqrt(jnp.float32(fan_in))
    # stored as [in, out] so the kernel computes x @ W (= x @ W_pt.T)
    w = jax.random.uniform(kw, (fan_in, fan_out), jnp.float32, -bound, bound)
    b = jax.random.uniform(kb, (1, fan_out), jnp.float32, -bound, bound)
    return w, b


def make_params(key, state_dim, action_dim, n_latent_var):
    keys = jax.random.split(key, 6)
    wa1, ba1 = _linear_init(keys[0], state_dim, n_latent_var)
    wa2, ba2 = _linear_init(keys[1], n_latent_var, n_latent_var)
    wa3, ba3 = _linear_init(keys[2], n_latent_var, action_dim)
    wv1, bv1 = _linear_init(keys[3], state_dim, n_latent_var)
    wv2, bv2 = _linear_init(keys[4], n_latent_var, n_latent_var)
    wv3, bv3 = _linear_init(keys[5], n_latent_var, 1)
    return dict(wa1=wa1, ba1=ba1, wa2=wa2, ba2=ba2, wa3=wa3, ba3=ba3,
                wv1=wv1, bv1=bv1, wv2=wv2, bv2=bv2, wv3=wv3, bv3=bv3)


def pack_params(params, *, action_dim, n_latent_var):
    """Pack both heads into bf16 weight slabs + one f32 bias slab."""
    H, A = n_latent_var, action_dim
    NW = 128 * pl.cdiv(A + 2, 128)          # lane-dense layer-3 / output width
    BW = max(2 * H, NW)

    W1 = jnp.concatenate([params["wa1"], params["wv1"]], axis=1)          # [S, 2H]
    W2 = jnp.stack([params["wa2"], params["wv2"]], axis=0)                # [2, H, H]
    W3 = (jnp.zeros((2, H, NW), jnp.float32)
          .at[0, :, :A].set(params["wa3"])
          .at[1, :, A].set(params["wv3"][:, 0]))                          # [2, H, NW]

    Bslab = (jnp.zeros((4, BW), jnp.float32)
             .at[0, :2 * H].set(
                 jnp.concatenate([params["ba1"], params["bv1"]], axis=1)[0])
             .at[1, :H].set(params["ba2"][0])
             .at[2, :H].set(params["bv2"][0])
             .at[3, :A].set(params["ba3"][0])
             .at[3, A].set(params["bv3"][0, 0]))                          # [4, BW]

    return (W1.astype(jnp.bfloat16), W2.astype(jnp.bfloat16),
            W3.astype(jnp.bfloat16), Bslab)


# ------------------------------- references -----------------------------------

def reference_evaluate_f32(state, action, params):
    """Pure-JAX f32 reference of the unfused PyTorch module."""
    h = jnp.tanh(state @ params["wa1"] + params["ba1"])
    h = jnp.tanh(h @ params["wa2"] + params["ba2"])
    logits = h @ params["wa3"] + params["ba3"]
    logp = jax.nn.log_softmax(logits, axis=-1)
    probs = jnp.exp(logp)
    ent = -jnp.sum(probs * logp, axis=-1)
    v = jnp.tanh(state @ params["wv1"] + params["bv1"])
    v = jnp.tanh(v @ params["wv2"] + params["bv2"])
    value = (v @ params["wv3"] + params["bv3"])[:, 0]
    alp = jnp.take_along_axis(logp, action[:, None], axis=-1)[:, 0]
    return alp, value, ent, probs


def reference_evaluate_bf16(state, action, params):
    """Same module, but matmul operands cast to bf16 (mirrors kernel numerics)."""
    def mm(a, w):
        return jax.lax.dot(a.astype(jnp.bfloat16), w.astype(jnp.bfloat16),
                           preferred_element_type=jnp.float32)
    h = jnp.tanh(mm(state, params["wa1"]) + params["ba1"])
    h = jnp.tanh(mm(h, params["wa2"]) + params["ba2"])
    logits = mm(h, params["wa3"]) + params["ba3"]
    logp = jax.nn.log_softmax(logits, axis=-1)
    probs = jnp.exp(logp)
    ent = -jnp.sum(probs * logp, axis=-1)
    v = jnp.tanh(mm(state, params["wv1"]) + params["bv1"])
    v = jnp.tanh(mm(v, params["wv2"]) + params["bv2"])
    value = (mm(v, params["wv3"]) + params["bv3"])[:, 0]
    alp = jnp.take_along_axis(logp, action[:, None], axis=-1)[:, 0]
    return alp, value, ent, probs


if __name__ == "__main__":
    # small shapes consistent with the module
    batch, state_dim, action_dim, n_latent_var = 8, 16, 4, 32

    key = jax.random.PRNGKey(0)
    k_params, k_state, k_act = jax.random.split(key, 3)

    params = make_params(k_params, state_dim, action_dim, n_latent_var)
    packed = pack_params(params, action_dim=action_dim, n_latent_var=n_latent_var)

    state = jax.random.normal(k_state, (batch, state_dim), dtype=jnp.float32)
    action = jax.random.randint(k_act, (batch,), 0, action_dim, dtype=jnp.int32)

    action_logprobs, state_value, dist_entropy, action_probs = jax.block_until_ready(
        evaluate(state, action, packed, action_dim=action_dim))

    # tight check: kernel vs. a bf16-matmul reference (same numerics)
    b_alp, b_val, b_ent, b_probs = reference_evaluate_bf16(state, action, params)
    assert jnp.allclose(action_probs, b_probs, atol=1e-4, rtol=1e-4)
    assert jnp.allclose(action_logprobs, b_alp, atol=1e-4, rtol=1e-4)
    assert jnp.allclose(dist_entropy, b_ent, atol=1e-4, rtol=1e-4)
    assert jnp.allclose(state_value, b_val, atol=1e-4, rtol=1e-4)

    # loose check: kernel vs. the f32 PyTorch-equivalent module (bf16 weight error)
    r_alp, r_val, r_ent, r_probs = reference_evaluate_f32(state, action, params)
    assert jnp.allclose(jnp.sum(action_probs, axis=-1), 1.0, atol=1e-3)
    assert jnp.allclose(action_probs, r_probs, atol=5e-2, rtol=5e-2)
    assert jnp.allclose(action_logprobs, r_alp, atol=5e-2, rtol=5e-2)
    assert jnp.allclose(dist_entropy, r_ent, atol=5e-2, rtol=5e-2)
    assert jnp.allclose(state_value, r_val, atol=5e-2, rtol=5e-2)

    assert action_logprobs.shape == (batch,)
    assert state_value.shape == (batch,)
    assert dist_entropy.shape == (batch,)
    assert action_probs.shape == (batch, action_dim)

    print("KERNEL_OK")
</pallas_src>

<mosaic_0001>
module attributes {stable_mosaic.version = 11 : i64} {
  func.func @_actor_critic_kernel(%arg0: i32, %arg1: memref<8x16xbf16, #tpu.memory_space<vmem>>, %arg2: memref<16x64xbf16, #tpu.memory_space<vmem>>, %arg3: memref<2x32x32xbf16, #tpu.memory_space<vmem>>, %arg4: memref<2x32x128xbf16, #tpu.memory_space<vmem>>, %arg5: memref<4x128xf32, #tpu.memory_space<vmem>>, %arg6: memref<8x128xf32, #tpu.memory_space<vmem>>) attributes {dimension_semantics = [#tpu.dimension_semantics<parallel>], iteration_bounds = array<i64: 1>, scalar_prefetch = 0 : i64, scratch_operands = 0 : i64, tpu.core_type = #tpu.core_type<tc>, window_params = [{transform_indices = @transform_0, window_bounds = array<i64: 8, 16>}, {pipeline_mode = #tpu.pipeline_mode<synchronous>, transform_indices = @transform_1, window_bounds = array<i64: 16, 64>}, {pipeline_mode = #tpu.pipeline_mode<synchronous>, transform_indices = @transform_2, window_bounds = array<i64: 2, 32, 32>}, {pipeline_mode = #tpu.pipeline_mode<synchronous>, transform_indices = @transform_3, window_bounds = array<i64: 2, 32, 128>}, {pipeline_mode = #tpu.pipeline_mode<synchronous>, transform_indices = @transform_4, window_bounds = array<i64: 4, 128>}, {transform_indices = @transform_5, window_bounds = array<i64: 8, 128>}]} {
    %c0 = arith.constant 0 : index
    %c0_0 = arith.constant 0 : index
    %0 = vector.load %arg1[%c0, %c0_0] : memref<8x16xbf16, #tpu.memory_space<vmem>>, vector<8x16xbf16>
    %c0_1 = arith.constant 0 : index
    %c0_2 = arith.constant 0 : index
    %1 = vector.load %arg2[%c0_1, %c0_2] : memref<16x64xbf16, #tpu.memory_space<vmem>>, vector<16x64xbf16>
    %cst = arith.constant dense<0.000000e+00> : vector<8x64xf32>
    %2 = tpu.matmul %0, %1, %cst {dimension_numbers = #tpu.dot_dimension_numbers<[1], [0], [0], [1], [0, 0, 1, 1], [], []>} : vector<8x16xbf16>, vector<16x64xbf16>, vector<8x64xf32> -> vector<8x64xf32>
    %c0_3 = arith.constant 0 : index
    %c0_4 = arith.constant 0 : index
    %3 = vector.load %arg5[%c0_3, %c0_4] : memref<4x128xf32, #tpu.memory_space<vmem>>, vector<1x64xf32>
    %4 = vector.broadcast %3 : vector<1x64xf32> to vector<8x64xf32>
    %5 = arith.addf %2, %4 : vector<8x64xf32>
    %6 = math.tanh %5 : vector<8x64xf32>
    %7 = arith.truncf %6 : vector<8x64xf32> to vector<8x64xbf16>
    %8 = vector.extract_strided_slice %7 {offsets = [0, 0], sizes = [8, 32], strides = [1, 1]} : vector<8x64xbf16> to vector<8x32xbf16>
    %c0_5 = arith.constant 0 : index
    %c0_6 = arith.constant 0 : index
    %c0_7 = arith.constant 0 : index
    %9 = vector.load %arg3[%c0_5, %c0_6, %c0_7] : memref<2x32x32xbf16, #tpu.memory_space<vmem>>, vector<1x32x32xbf16>
    %10 = vector.shape_cast %9 : vector<1x32x32xbf16> to vector<32x32xbf16>
    %cst_8 = arith.constant dense<0.000000e+00> : vector<8x32xf32>
    %11 = tpu.matmul %8, %10, %cst_8 {dimension_numbers = #tpu.dot_dimension_numbers<[1], [0], [0], [1], [0, 0, 1, 1], [], []>} : vector<8x32xbf16>, vector<32x32xbf16>, vector<8x32xf32> -> vector<8x32xf32>
    %c1 = arith.constant 1 : index
    %c0_9 = arith.constant 0 : index
    %12 = vector.load %arg5[%c1, %c0_9] : memref<4x128xf32, #tpu.memory_space<vmem>>, vector<1x32xf32>
    %13 = vector.broadcast %12 : vector<1x32xf32> to vector<8x32xf32>
    %14 = arith.addf %11, %13 : vector<8x32xf32>
    %15 = math.tanh %14 : vector<8x32xf32>
    %16 = arith.truncf %15 : vector<8x32xf32> to vector<8x32xbf16>
    %17 = vector.extract_strided_slice %7 {offsets = [0, 32], sizes = [8, 32], strides = [1, 1]} : vector<8x64xbf16> to vector<8x32xbf16>
    %c1_10 = arith.constant 1 : index
    %c0_11 = arith.constant 0 : index
    %c0_12 = arith.constant 0 : index
    %18 = vector.load %arg3[%c1_10, %c0_11, %c0_12] : memref<2x32x32xbf16, #tpu.memory_space<vmem>>, vector<1x32x32xbf16>
    %19 = vector.shape_cast %18 : vector<1x32x32xbf16> to vector<32x32xbf16>
    %cst_13 = arith.constant dense<0.000000e+00> : vector<8x32xf32>
    %20 = tpu.matmul %17, %19, %cst_13 {dimension_numbers = #tpu.dot_dimension_numbers<[1], [0], [0], [1], [0, 0, 1, 1], [], []>} : vector<8x32xbf16>, vector<32x32xbf16>, vector<8x32xf32> -> vector<8x32xf32>
    %c2 = arith.constant 2 : index
    %c0_14 = arith.constant 0 : index
    %21 = vector.load %arg5[%c2, %c0_14] : memref<4x128xf32, #tpu.memory_space<vmem>>, vector<1x32xf32>
    %22 = vector.broadcast %21 : vector<1x32xf32> to vector<8x32xf32>
    %23 = arith.addf %20, %22 : vector<8x32xf32>
    %24 = math.tanh %23 : vector<8x32xf32>
    %25 = arith.truncf %24 : vector<8x32xf32> to vector<8x32xbf16>
    %c0_15 = arith.constant 0 : index
    %c0_16 = arith.constant 0 : index
    %c0_17 = arith.constant 0 : index
    %26 = vector.load %arg4[%c0_15, %c0_16, %c0_17] : memref<2x32x128xbf16, #tpu.memory_space<vmem>>, vector<1x32x128xbf16>
    %27 = vector.shape_cast %26 : vector<1x32x128xbf16> to vector<32x128xbf16>
    %cst_18 = arith.constant dense<0.000000e+00> : vector<8x128xf32>
    %28 = tpu.matmul %16, %27, %cst_18 {dimension_numbers = #tpu.dot_dimension_numbers<[1], [0], [0], [1], [0, 0, 1, 1], [], []>} : vector<8x32xbf16>, vector<32x128xbf16>, vector<8x128xf32> -> vector<8x128xf32>
    %c1_19 = arith.constant 1 : index
    %c0_20 = arith.constant 0 : index
    %c0_21 = arith.constant 0 : index
    %29 = vector.load %arg4[%c1_19, %c0_20, %c0_21] : memref<2x32x128xbf16, #tpu.memory_space<vmem>>, vector<1x32x128xbf16>
    %30 = vector.shape_cast %29 : vector<1x32x128xbf16> to vector<32x128xbf16>
    %cst_22 = arith.constant dense<0.000000e+00> : vector<8x128xf32>
    %31 = tpu.matmul %25, %30, %cst_22 {dimension_numbers = #tpu.dot_dimension_numbers<[1], [0], [0], [1], [0, 0, 1, 1], [], []>} : vector<8x32xbf16>, vector<32x128xbf16>, vector<8x128xf32> -> vector<8x128xf32>
    %32 = arith.addf %28, %31 : vector<8x128xf32>
    %c3 = arith.constant 3 : index
    %c0_23 = arith.constant 0 : index
    %33 = vector.load %arg5[%c3, %c0_23] : memref<4x128xf32, #tpu.memory_space<vmem>>, vector<1x128xf32>
    %34 = vector.broadcast %33 : vector<1x128xf32> to vector<8x128xf32>
    %35 = arith.addf %32, %34 : vector<8x128xf32>
    %36 = tpu.iota {dimensions = array<i32: 1>} : vector<8x128xi32>
    %c4_i32 = arith.constant 4 : i32
    %37 = vector.broadcast %c4_i32 : i32 to vector<8x128xi32>
    %38 = arith.cmpi slt, %36, %37 : vector<8x128xi32>
    %cst_24 = arith.constant -1.000000e+30 : f32
    %39 = vector.broadcast %cst_24 : f32 to vector<8x128xf32>
    %40 = arith.select %38, %35, %39 : vector<8x128xi1>, vector<8x128xf32>
    %cst_25 = arith.constant dense<0xFF800000> : vector<8xf32>
    %41 = vector.multi_reduction <maximumf>, %40, %cst_25 [1] : vector<8x128xf32> to vector<8xf32>
    %42 = vector.shape_cast %41 : vector<8xf32> to vector<8x1xf32>
    %43 = vector.broadcast %42 : vector<8x1xf32> to vector<8x128xf32>
    %44 = arith.subf %35, %43 : vector<8x128xf32>
    %45 = math.exp %44 : vector<8x128xf32>
    %cst_26 = arith.constant 0.000000e+00 : f32
    %46 = vector.broadcast %cst_26 : f32 to vector<8x128xf32>
    %47 = arith.select %38, %45, %46 : vector<8x128xi1>, vector<8x128xf32>
    %cst_27 = arith.constant dense<0.000000e+00> : vector<8xf32>
    %48 = vector.multi_reduction <add>, %47, %cst_27 [1] : vector<8x128xf32> to vector<8xf32>
    %49 = vector.shape_cast %48 : vector<8xf32> to vector<8x1xf32>
    %50 = vector.broadcast %42 : vector<8x1xf32> to vector<8x128xf32>
    %51 = arith.subf %35, %50 : vector<8x128xf32>
    %52 = math.log %49 : vector<8x1xf32>
    %53 = vector.broadcast %52 : vector<8x1xf32> to vector<8x128xf32>
    %54 = arith.subf %51, %53 : vector<8x128xf32>
    %55 = vector.broadcast %49 : vector<8x1xf32> to vector<8x128xf32>
    %56 = arith.divf %47, %55 : vector<8x128xf32>
    %57 = arith.mulf %56, %54 : vector<8x128xf32>
    %cst_28 = arith.constant dense<0.000000e+00> : vector<8xf32>
    %58 = vector.multi_reduction <add>, %57, %cst_28 [1] : vector<8x128xf32> to vector<8xf32>
    %59 = vector.shape_cast %58 : vector<8xf32> to vector<8x1xf32>
    %cst_29 = arith.constant 0.000000e+00 : f32
    %60 = vector.broadcast %cst_29 : f32 to vector<8x1xf32>
    %61 = arith.subf %60, %59 : vector<8x1xf32>
    %c4_i32_30 = arith.constant 4 : i32
    %62 = vector.broadcast %c4_i32_30 : i32 to vector<8x128xi32>
    %63 = arith.cmpi eq, %36, %62 : vector<8x128xi32>
    %cst_31 = arith.constant 0.000000e+00 : f32
    %64 = vector.broadcast %cst_31 : f32 to vector<8x128xf32>
    %65 = arith.select %63, %35, %64 : vector<8x128xi1>, vector<8x128xf32>
    %cst_32 = arith.constant dense<0.000000e+00> : vector<8xf32>
    %66 = vector.multi_reduction <add>, %65, %cst_32 [1] : vector<8x128xf32> to vector<8xf32>
    %67 = vector.shape_cast %66 : vector<8xf32> to vector<8x1xf32>
    %c4_i32_33 = arith.constant 4 : i32
    %68 = vector.broadcast %c4_i32_33 : i32 to vector<8x128xi32>
    %69 = arith.cmpi eq, %36, %68 : vector<8x128xi32>
    %c5_i32 = arith.constant 5 : i32
    %70 = vector.broadcast %c5_i32 : i32 to vector<8x128xi32>
    %71 = arith.cmpi eq, %36, %70 : vector<8x128xi32>
    %cst_34 = arith.constant 0.000000e+00 : f32
    %72 = vector.shape_cast %67 : vector<8x1xf32> to vector<8x1xf32>
    %73 = vector.broadcast %72 : vector<8x1xf32> to vector<8x128xf32>
    %74 = vector.broadcast %cst_34 : f32 to vector<8x128xf32>
    %75 = arith.select %71, %73, %74 : vector<8x128xi1>, vector<8x128xf32>
    %76 = vector.shape_cast %61 : vector<8x1xf32> to vector<8x1xf32>
    %77 = vector.broadcast %76 : vector<8x1xf32> to vector<8x128xf32>
    %78 = arith.select %69, %77, %75 : vector<8x128xi1>, vector<8x128xf32>
    %79 = arith.select %38, %54, %78 : vector<8x128xi1>, vector<8x128xf32>
    %c0_35 = arith.constant 0 : index
    %c0_36 = arith.constant 0 : index
    %80 = vector.load %arg6[%c0_35, %c0_36] : memref<8x128xf32, #tpu.memory_space<vmem>>, vector<8x128xf32>
    tpu.vector_store %arg6[%c0_35, %c0_36], %79 {strides = array<i32>} : memref<8x128xf32, #tpu.memory_space<vmem>>, vector<8x128xf32>,
    return
  }
  func.func @transform_0(%arg0: i32) -> (i32, i32) {
    %c0_i32 = arith.constant 0 : i32
    %c0_i32_0 = arith.constant 0 : i32
    return %arg0, %c0_i32 : i32, i32
  }
  func.func @transform_1(%arg0: i32) -> (i32, i32) {
    %c0_i32 = arith.constant 0 : i32
    %c0_i32_0 = arith.constant 0 : i32
    %c0_i32_1 = arith.constant 0 : i32
    return %c0_i32, %c0_i32_0 : i32, i32
  }
  func.func @transform_2(%arg0: i32) -> (i32, i32, i32) {
    %c0_i32 = arith.constant 0 : i32
    %c0_i32_0 = arith.constant 0 : i32
    %c0_i32_1 = arith.constant 0 : i32
    %c0_i32_2 = arith.constant 0 : i32
    return %c0_i32, %c0_i32_0, %c0_i32_1 : i32, i32, i32
  }
  func.func @transform_3(%arg0: i32) -> (i32, i32, i32) {
    %c0_i32 = arith.constant 0 : i32
    %c0_i32_0 = arith.constant 0 : i32
    %c0_i32_1 = arith.constant 0 : i32
    %c0_i32_2 = arith.constant 0 : i32
    return %c0_i32, %c0_i32_0, %c0_i32_1 : i32, i32, i32
  }
  func.func @transform_4(%arg0: i32) -> (i32, i32) {
    %c0_i32 = arith.constant 0 : i32
    %c0_i32_0 = arith.constant 0 : i32
    %c0_i32_1 = arith.constant 0 : i32
    return %c0_i32, %c0_i32_0 : i32, i32
  }
  func.func @transform_5(%arg0: i32) -> (i32, i32) {
    %c0_i32 = arith.constant 0 : i32
    %c0_i32_0 = arith.constant 0 : i32
    return %arg0, %c0_i32 : i32, i32
  }
}

</mosaic_0001>

<bundles_post_ra>
// kernel: tpu_custom_call.1
= control target key start
LH: loop header
LB: loop body
LE: loop exit
PB: predicated region body
PF: predicated region fallthrough
CT: control target
= control target key end

     0   :  { %10 = vsyncpa [#allocation3], 0  ;;  %s628_s0 = inlined_call_operand.hbm [shape: bf16[8,16], index: 0, kind: input, shape index: {}]   ;;  %s629_s1 = inlined_call_operand.hbm [shape: bf16[16,64], index: 1, kind: input, shape index: {}]   ;;  %s630_s2 = inlined_call_operand.hbm [shape: bf16[2,32,32], index: 2, kind: input, shape index: {}]   ;;  %s631_s3 = inlined_call_operand.hbm [shape: bf16[2,32,128], index: 3, kind: input, shape index: {}]   ;;  %s632_s4 = inlined_call_operand.hbm [shape: f32[4,128], index: 4, kind: input, shape index: {}]   ;;  %s633_s5 = inlined_call_operand.hbm [shape: f32[8,128], index: 5, kind: output, shape index: {}]  }
   0x1   :  { %11 = vsyncpa [#allocation6], 0 }
   0x2   :  { %12 = vsyncpa [#allocation9], 0  ;;  %s29_s20 = sshll.u32 %s629_s1, 4  ;;  %s30_s20 = int_to_ptr.hbm [resolvable:$true] %s29_s20 }
   0x3   :  { %13 = vsyncpa [#allocation4], 0  ;;  %s562_s21 = smov [#allocation5]   ;;  %s55_s25 = sshll.u32 %s631_s3, 4  ;;  %s56_s25 = int_to_ptr.hbm [resolvable:$true] %s55_s25 }
   0x4   :  { %s31_s22 = sshll.u32 %s562_s21, 4  ;;  %s563_s26 = smov 64   ;;  %s32_s22 = int_to_ptr.vmem [resolvable:$true] %s31_s22 }
   0x5   :  { %s564_s27 = smov 4   ;;  %s565_s28 = smov [#allocation8]  }
   0x6   :  { %37 = dma.hbm_to_vmem [thread:$0]  %s30_s20, 128, %s32_s22, [#allocation6], %s563_s26, %s563_s26, %s564_s27  }
   0x7   :  { %s57_s29 = sshll.u32 %s565_s28, 4  ;;  %s19_s7 = sshll.u32 %s628_s0, 4  ;;  %s58_s29 = int_to_ptr.vmem [resolvable:$true] %s57_s29  ;;  %s20_s7 = int_to_ptr.hbm [resolvable:$true] %s19_s7 }
   0x8   :  { %63 = dma.hbm_to_vmem [thread:$0]  %s56_s25, 512, %s58_s29, [#allocation9], %s563_s26, %s563_s26, %s564_s27  }
   0x9   :  { %s42_s9 = sshll.u32 %s630_s2, 4  ;;  %s566_s10 = smov [#allocation2]   ;;  %s43_s9 = int_to_ptr.hbm [resolvable:$true] %s42_s9 }
   0xa   :  { %s21_s11 = sshll.u32 %s566_s10, 4  ;;  %s567_s3 = smov [#allocation7]   ;;  %s22_s11 = int_to_ptr.vmem [resolvable:$true] %s21_s11 }
   0xb   :  { %24 = dma.hbm_to_vmem [thread:$0]  %s20_s7, 64, %s22_s11, [#allocation3]  }
   0xc   :  { %s44_s12 = sshll.u32 %s567_s3, 4  ;;  %s69_s15 = sshll.u32 %s632_s4, 4  ;;  %s45_s12 = int_to_ptr.vmem [resolvable:$true] %s44_s12  ;;  %s70_s15 = int_to_ptr.hbm [resolvable:$true] %s69_s15 }
   0xd   :  { %50 = dma.hbm_to_vmem [thread:$0]  %s43_s9, 512, %s45_s12, [#allocation6], %s563_s26, %s563_s26, %s564_s27  }
   0xe   :  { %s568_s0 = smov [#allocation10]  }
   0xf   :  { %s71_s16 = sshll.u32 %s568_s0, 4  ;;  %s72_s16 = int_to_ptr.vmem [resolvable:$true] %s71_s16 }
  0x10   :  { %74 = dma.hbm_to_vmem [thread:$0]  %s70_s15, 64, %s72_s16, [#allocation9]  }
  0x11   :  { %554 = dma.done.wait [#allocation3], 64  }
  0x12   :  { %555 = vsyncadd [#allocation3], 4294967232 }
  0x13   :  { %556 = dma.done.wait [#allocation6], 640  }
  0x14   :  { %557 = vsyncadd [#allocation6], 4294966656 }
  0x15   :  { %558 = dma.done.wait [#allocation9], 576  }
  0x16   :  { %559 = vsyncadd [#allocation9], 4294966720  ;;  %v376_v0 = vld [vmem:[#allocation5] sm:$0xff]  ;;  %v96_v1 = vld [vmem:[#allocation2] sm:$0xf]  ;;  %vm107_vm0 = vcmask 130048   ;;  %v273_v33 = vlaneseq }
  0x17   :  { %118 = vmatpush.bf16.msra.mxu0 %v376_v0  ;;  %v378_v2 = vld [vmem:[#allocation7 + $0x8] sm:$0xff]  ;;  %v377_v3 = vld [vmem:[#allocation7] sm:$0xff]  ;;  %v380_v4 = vld [vmem:[#allocation7 + $0x18] sm:$0xff]  ;;  %vm144_vm1 = vcmask 261120   ;;  %s569_s2 = smov 96   ;;  %s570_s4 = smov [#allocation11]  }
  0x18   :  { %154 = vmatpush.bf16.msra.mxu1 %v378_v2  ;;  %196 = vmatpush.bf16.msra.mxu2 %v380_v4  ;;  %v379_v5 = vld [vmem:[#allocation7 + $0x10] sm:$0xff]  ;;  %v394_v6 = vld [vmem:[#allocation10] ss:$0 sm:$0xff]  ;;  %v382_v14 = vld [vmem:[#allocation8 + $0x8] sm:$0xff]  ;;  %v274_v34 = vand.u32 127, %v273_v33  ;;  %s321_s17 = sshll.u32 %s570_s4, 4  ;;  %s322_s17 = int_to_ptr.vmem [resolvable:$true] %s321_s17 }
  0x19   :  { %v381_v15 = vld [vmem:[#allocation8] sm:$0xff]  ;;  %v384_v23 = vld [vmem:[#allocation8 + $0x18] sm:$0xff]  ;;  %v383_v24 = vld [vmem:[#allocation8 + $0x10] sm:$0xff]  ;;  %s323_s20 = sshll.u32 %s633_s5, 4  ;;  %s324_s20 = int_to_ptr.hbm [resolvable:$true] %s323_s20 }
  0x1a   :  { %339 = vmatmul.msk.bf16.vlgmr.msra.gmra.mxu0 %vm107_vm0, %v96_v1  ;;  %v395_v17 = vld [vmem:[#allocation10 + $0x1] ss:$0 sm:$0xff]  ;;  %235 = vmatpush.bf16.msra.mxu3 %v384_v23  ;;  %v396_v25 = vld [vmem:[#allocation10 + $0x2] ss:$0 sm:$0xff]  ;;  %v397_v35 = vld [vmem:[#allocation10 + $0x3] ss:$0 sm:$0xff] }
  0x1b   :  { %263 = vmatpush.bf16.msrb.mxu0 %v382_v14  ;;  %vm307_vm2 = vcmp.eq.s32.totalorder %v274_v34, 4  ;;  %vm275_vm3 = vcmp.lt.s32.totalorder %v274_v34, 4  ;;  %vm311_vm8 = vcmp.eq.s32.totalorder %v274_v34, 5 }
  0x1c   :  { %155 = vmatpush.bf16.msra.mxu1 %v377_v3  ;;  %197 = vmatpush.bf16.msra.mxu2 %v379_v5 }
  0x1e   :  { %236 = vmatpush.bf16.msra.mxu3 %v383_v24 }
  0x1f   :  { %264 = vmatpush.bf16.msrb.mxu0 %v381_v15 }
  0x97   :  { %v120_v7 = vpop.f32.mrf.mxu0 }
  0x98   :  { %v121_v8 = vadd.f32 %v394_v6, %v120_v7 }
  0x9a   :  { %398 = vtanh.f32 %v121_v8 }
  0x9f   :  { %v122_v9 = vpop.f32.mrf.mxu0 }
  0xa0   :  { %v399_v10 = vpop.eup %398 }
  0xa1   :  { %v125_v11 = vpack.c.bf16 %v399_v10, %v399_v10 }
  0xa3   :  { %348 = vmatmul.msk.bf16.vlgmr.msra.gmra.mxu1 %vm144_vm1, %v125_v11  ;;  %v171_v12 = vunpack.c.l.b16 %v125_v11 }
  0xa5   :  { %v172_v13 = vpack.c.b16 %v171_v12, %v171_v12 }
  0xa7   :  { %173 = vrot.lane.b32.xlu0 %v172_v13, %s569_s2 }
 0x119   :  { %v174_v16 = vpop.permute.xlu0 %173 }
 0x11a   :  { %357 = vmatmul.msk.bf16.vlgmr.msra.gmra.mxu2 %vm144_vm1, %v174_v16 }
 0x120   :  { %v157_v18 = vpop.f32.mrf.mxu1 }
 0x121   :  { %v158_v19 = vadd.f32 %v395_v17, %v157_v18 }
 0x123   :  { %400 = vtanh.f32 %v158_v19 }
 0x128   :  { %v159_v20 = vpop.f32.mrf.mxu1 }
 0x129   :  { %v401_v21 = vpop.eup %400 }
 0x12a   :  { %v162_v22 = vpack.c.bf16 %v401_v21, %v401_v21 }
 0x12c   :  { %375 = vmatmul.msk.bf16.vlgmr.msrb.gmra.mxu0 %vm144_vm1, %v162_v22 }
 0x19d   :  { %v199_v26 = vpop.f32.mrf.mxu2 }
 0x19e   :  { %v200_v27 = vadd.f32 %v396_v25, %v199_v26 }
 0x1a0   :  { %402 = vtanh.f32 %v200_v27 }
 0x1a5   :  { %v201_v28 = vpop.f32.mrf.mxu2 }
 0x1a6   :  { %v403_v29 = vpop.eup %402 }
 0x1a7   :  { %v204_v30 = vpack.c.bf16 %v403_v29, %v403_v29 }
 0x1a9   :  { %366 = vmatmul.msk.bf16.vlgmr.msra.gmra.mxu3 %vm144_vm1, %v204_v30  ;;  %v266_v31 = vpop.f32.mrf.mxu0 }
 0x1b1   :  { %v268_v32 = vpop.f32.mrf.mxu0 }
 0x22c   :  { %v238_v36 = vpop.f32.mrf.mxu3 }
 0x22d   :  { %v267_v37 = vadd.f32 %v266_v31, %v238_v36 }
 0x22f   :  { %v272_v38 = vadd.f32 %v397_v35, %v267_v37 }
 0x231   :  { %v308_v39 = vsel %vm307_vm2, %v272_v38, 0.0  ;;  %v276_v40 = vsel %vm275_vm3, %v272_v38, -1e+30 }
 0x232   :  { %309 = vadd.xlane.f32.xlu2 %v308_v39  ;;  %277 = vmax.xlane.f32.xlu0 %v276_v40 }
 0x234   :  { %v240_v41 = vpop.f32.mrf.mxu3 }
 0x2a5   :  { %v278_v42 = vpop.xlane.xlu0 %277  ;;  %v310_v63 = vpop.xlane.xlu2 %309 }
 0x2a6   :  { %v279_v43 = vsub.f32 %v272_v38, %v278_v42  ;;  %v312_v2 = vsel %vm311_vm8, %v310_v63, 0.0 }
 0x2a8   :  { %v280_v44 = vmul.f32 1.442695, %v279_v43 }
 0x2aa   :  { %404 = vpow2.f32 %v280_v44 }
 0x2b0   :  { %v405_v45 = vpop.eup %404 }
 0x2b1   :  { %v282_v46 = vsel %vm275_vm3, %v405_v45, 0.0 }
 0x2b2   :  { %283 = vadd.xlane.f32.xlu1 %v282_v46 }
 0x325   :  { %v284_v47 = vpop.xlane.xlu1 %283 }
 0x326   :  { %406 = vrcp.f32 %v284_v47  ;;  %v299_v52 = vand.u32 2147483648, %v284_v47  ;;  %v297_v54 = vand.u32 2147483647, %v284_v47  ;;  %vm293_vm5 = vweird.f32 %v284_v47 }
 0x327   :  { %408 = vlog2.f32 %v284_v47 }
 0x328   :  { %v300_v57 = vor.u32 1.1754944e-38, %v299_v52  ;;  %vm298_vm7 = vcmp.eq.f32.partialorder %v297_v54, 8.507059e+37 }
 0x32c   :  { %v407_v48 = vpop.eup %406 }
 0x32d   :  { %v289_v49 = vmul.f32 %v407_v48, %v284_v47  ;;  %v409_v51 = vpop.eup %408  ;;  %vm294_vm4 = vweird.f32 %v407_v48 }
 0x32e   :  { %v286_v55 = vmul.f32 0.6931472, %v409_v51  ;;  %vm295_vm6 = vmor %vm293_vm5, %vm294_vm4 }
 0x32f   :  { %v290_v50 = vsub.f32 1.0, %v289_v49 }
 0x330   :  { %v287_v60 = vsub.f32 %v279_v43, %v286_v55 }
 0x331   :  { %v291_v53 = vmul.f32 %v407_v48, %v290_v50 }
 0x333   :  { %v292_v56 = vadd.f32 %v407_v48, %v291_v53 }
 0x335   :  { %v296_v58 = vsel %vm295_vm6, %v407_v48, %v292_v56 }
 0x336   :  { %v301_v59 = vsel %vm298_vm7, %v300_v57, %v296_v58 }
 0x337   :  { %v302_v61 = vmul.f32 %v301_v59, %v282_v46 }
 0x339   :  { %v303_v62 = vmul.f32 %v302_v61, %v287_v60 }
 0x33b   :  { %304 = vadd.xlane.f32.xlu1 %v303_v62 }
 0x3ae   :  { %v305_v0 = vpop.xlane.xlu1 %304 }
 0x3af   :  { %v306_v1 = vsub.f32 0.0, %v305_v0 }
 0x3b1   :  { %v313_v3 = vsel %vm307_vm2, %v306_v1, %v312_v2 }
 0x3b2   :  { %v314_v4 = vsel %vm275_vm3, %v287_v60, %v313_v3 }
 0x3b3   :  { %315 = vst [vmem:[#allocation11] sm:$0xff] %v314_v4 }
 0x3b4   :  { %326 = dma.vmem_to_hbm [thread:$0]  %s322_s17, 128, %s324_s20, [#allocation4]  }
 0x3b5   :  { %560 = dma.done.wait [#allocation4], 128  }
 0x3b6   :  { %561 = vsyncadd [#allocation4], 4294967168 }
 0x3b7   :  { %331 = vsyncpa [#allocation3], 1 }
 0x3b8   :  { %332 = vsyncpa [#allocation6], 1 }
 0x3b9   :  { %333 = vsyncpa [#allocation9], 1 }
 0x3ba   :  { %334 = vsyncpa [#allocation4], 1 }

</bundles_post_ra>
